<compile_context>
chip_gen: v7x
topology: tpu7x:2x2x1
jax: 0.10.0
libtpu: 0.0.40
codegen_flags: <defaults>
</compile_context>

<pallas_src>
import functools

import jax
import jax.numpy as jnp
from jax.experimental import pallas as pl
from jax.experimental.pallas import tpu as pltpu


def _round_up(x, m):
    return ((x + m - 1) // m) * m


# ----------------------------- Pallas kernel --------------------------------

def _vq_kernel(x_ref, emb_ref, sqe_ref, q_ref, idx_ref, *, num_codes):
    """Nearest-codebook assignment + quantize for one (codebook, token-tile).

    x_ref   : (1, TN, Dp) f32   token tile (D zero-padded to Dp)
    emb_ref : (1, Cp, Dp) f32   codebook (padded rows are all-zero)
    sqe_ref : (1, 1,  Cp) f32   ||e||^2 per code (padded rows set huge)
    q_ref   : (1, TN, Dp) f32   quantized output
    idx_ref : (1, TN, 1 ) i32   nearest-code indices
    """
    x = x_ref[0]                                   # (TN, Dp)
    e = emb_ref[0]                                 # (Cp, Dp)
    sqe = sqe_ref[0]                               # (1, Cp)

    # d^2 (up to the row-constant ||x||^2) = ||e||^2 - 2 x.e^T  -- one MXU push.
    scores = jax.lax.dot_general(
        x, e, dimension_numbers=(((1,), (1,)), ((), ())),
        preferred_element_type=jnp.float32)        # (TN, Cp)
    d2 = sqe - 2.0 * scores                        # (TN, Cp), stays in VMEM

    # First-argmin via masked-iota min (avoids relying on argmin lowering).
    min_d = jnp.min(d2, axis=-1, keepdims=True)                    # (TN, 1)
    col = jax.lax.broadcasted_iota(jnp.int32, d2.shape, 1)         # (TN, Cp)
    ids = jnp.min(jnp.where(d2 <= min_d, col, num_codes),
                  axis=-1, keepdims=True)                          # (TN, 1)

    # Exact gather of the winning code rows as a one-hot MXU matmul.
    onehot = (col == ids).astype(jnp.float32)                      # (TN, Cp)
    q = jnp.dot(onehot, e, preferred_element_type=jnp.float32)     # (TN, Dp)

    q_ref[0] = q.astype(q_ref.dtype)
    idx_ref[0] = ids.astype(jnp.int32)


# ----------------------------- op wrapper ------------------------------------

def vq_codebook_lookup(flatten, embed, *, tile_n=512):
    """flatten: (H, N, D) f32, embed: (H, C, D) f32.

    Returns (quantize (H, N, D) f32, indices (H, N) int32).
    """
    h, n, d = flatten.shape
    _, c, _ = embed.shape

    dp = _round_up(d, 128)                 # lane-dense matmul / store dims
    cp = _round_up(c, 128)
    tn = min(tile_n, _round_up(n, 8))      # token tile, multiple of 8 sublanes
    np_ = _round_up(n, tn)

    xf = jnp.pad(flatten.astype(jnp.float32),
                 ((0, 0), (0, np_ - n), (0, dp - d)))
    ef = jnp.pad(embed.astype(jnp.float32),
                 ((0, 0), (0, cp - c), (0, dp - d)))
    # ||e||^2 once (not per tile); padded codebook rows must never win.
    sqe = jnp.sum(ef * ef, axis=-1)                               # (H, Cp)
    sqe = jnp.where(jnp.arange(cp)[None, :] < c, sqe, jnp.float32(1e30))
    sqe = sqe[:, None, :]                                         # (H, 1, Cp)

    grid = (h, np_ // tn)
    kern = functools.partial(_vq_kernel, num_codes=c)

    q, idx = pl.pallas_call(
        kern,
        out_shape=(
            jax.ShapeDtypeStruct((h, np_, dp), jnp.float32),
            jax.ShapeDtypeStruct((h, np_, 1), jnp.int32),
        ),
        grid=grid,
        in_specs=[
            pl.BlockSpec((1, tn, dp), lambda i, j: (i, j, 0)),   # token tile
            pl.BlockSpec((1, cp, dp), lambda i, j: (i, 0, 0)),   # codebook
            pl.BlockSpec((1, 1, cp), lambda i, j: (i, 0, 0)),    # ||e||^2
        ],
        out_specs=(
            pl.BlockSpec((1, tn, dp), lambda i, j: (i, j, 0)),
            pl.BlockSpec((1, tn, 1), lambda i, j: (i, j, 0)),
        ),
        compiler_params=pltpu.CompilerParams(
            dimension_semantics=("parallel", "parallel"),
            vmem_limit_bytes=32 * 1024 * 1024,
        ),
    )(xf, ef, sqe)

    return q[:, :n, :d], idx[:, :n, 0]


# ----------------------------- module forward --------------------------------

def euclidean_codebook_forward(x, embed):
    """Functional EuclideanCodebook.forward -> (quantize, embed_ind)."""
    needs_codebook_dim = x.ndim < 4
    x = x.astype(jnp.float32)
    if needs_codebook_dim:
        x = x[None, ...]                    # rearrange('... -> 1 ...')
    lead = x.shape[:-1]                     # (h, ...)
    h, d = x.shape[0], x.shape[-1]
    flatten = x.reshape(h, -1, d)           # 'h ... d -> h (...) d'

    quantize, embed_ind = vq_codebook_lookup(flatten, embed)

    quantize = quantize.reshape(*lead, d)
    embed_ind = embed_ind.reshape(*lead)
    if needs_codebook_dim:
        quantize, embed_ind = quantize[0], embed_ind[0]
    return quantize, embed_ind


# ----------------------------- main -------------------------------------------

if __name__ == "__main__":
    key = jax.random.PRNGKey(0)
    k_embed, k_x = jax.random.split(key)

    num_codebooks, codebook_size, dim = 1, 128, 32
    batch, seq = 2, 16

    # uniform_init (kaiming-uniform style) codebook, deterministic.
    bound = (3.0 / dim) ** 0.5
    embed = jax.random.uniform(
        k_embed, (num_codebooks, codebook_size, dim), jnp.float32, -bound, bound)
    # x with ndim < 4 exercises the needs_codebook_dim path of the module.
    x = jax.random.normal(k_x, (batch, seq, dim), jnp.float32)

    fwd = jax.jit(euclidean_codebook_forward)
    quantize, embed_ind = fwd(x, embed)
    jax.block_until_ready((quantize, embed_ind))

    # Plain-JAX reference (same distance identity; sqrt is monotone so the
    # argmin matches torch.cdist-based argmax(-dist)).
    flatten = x.reshape(1, batch * seq, dim)
    d2_ref = (jnp.sum(embed ** 2, -1)[:, None, :]
              - 2.0 * jnp.einsum('hnd,hcd->hnc', flatten, embed))
    ref_ids = jnp.argmin(d2_ref, axis=-1).reshape(batch, seq)
    ref_q = embed[0][ref_ids]

    assert quantize.shape == (batch, seq, dim), quantize.shape
    assert embed_ind.shape == (batch, seq), embed_ind.shape
    assert bool(jnp.all(embed_ind == ref_ids))
    assert bool(jnp.allclose(quantize, ref_q, atol=1e-5))
    assert bool(jnp.all(jnp.isfinite(quantize)))
    print("KERNEL_OK")
</pallas_src>

<mosaic_0001>
module attributes {stable_mosaic.version = 11 : i64} {
  func.func @_vq_kernel(%arg0: i32, %arg1: i32, %arg2: memref<1x32x128xf32, #tpu.memory_space<vmem>>, %arg3: memref<1x128x128xf32, #tpu.memory_space<vmem>>, %arg4: memref<1x1x128xf32, #tpu.memory_space<vmem>>, %arg5: memref<1x32x128xf32, #tpu.memory_space<vmem>>, %arg6: memref<1x32x1xi32, #tpu.memory_space<vmem>>) attributes {dimension_semantics = [#tpu.dimension_semantics<parallel>, #tpu.dimension_semantics<parallel>], iteration_bounds = array<i64: 1, 1>, scalar_prefetch = 0 : i64, scratch_operands = 0 : i64, tpu.core_type = #tpu.core_type<tc>, window_params = [{transform_indices = @transform_0, window_bounds = array<i64: 1, 32, 128>}, {transform_indices = @transform_1, window_bounds = array<i64: 1, 128, 128>}, {transform_indices = @transform_2, window_bounds = array<i64: 1, 1, 128>}, {transform_indices = @transform_3, window_bounds = array<i64: 1, 32, 128>}, {transform_indices = @transform_4, window_bounds = array<i64: 1, 32, 1>}]} {
    %c0 = arith.constant 0 : index
    %c0_0 = arith.constant 0 : index
    %c0_1 = arith.constant 0 : index
    %0 = vector.load %arg2[%c0, %c0_0, %c0_1] : memref<1x32x128xf32, #tpu.memory_space<vmem>>, vector<1x32x128xf32>
    %1 = vector.shape_cast %0 : vector<1x32x128xf32> to vector<32x128xf32>
    %c0_2 = arith.constant 0 : index
    %c0_3 = arith.constant 0 : index
    %c0_4 = arith.constant 0 : index
    %2 = vector.load %arg3[%c0_2, %c0_3, %c0_4] : memref<1x128x128xf32, #tpu.memory_space<vmem>>, vector<1x128x128xf32>
    %3 = vector.shape_cast %2 : vector<1x128x128xf32> to vector<128x128xf32>
    %c0_5 = arith.constant 0 : index
    %c0_6 = arith.constant 0 : index
    %c0_7 = arith.constant 0 : index
    %4 = vector.load %arg4[%c0_5, %c0_6, %c0_7] : memref<1x1x128xf32, #tpu.memory_space<vmem>>, vector<1x1x128xf32>
    %5 = vector.shape_cast %4 : vector<1x1x128xf32> to vector<1x128xf32>
    %cst = arith.constant dense<0.000000e+00> : vector<32x128xf32>
    %6 = tpu.matmul %1, %3, %cst {dimension_numbers = #tpu.dot_dimension_numbers<[1], [1], [0], [0], [0, 0, 1, 0], [], []>} : vector<32x128xf32>, vector<128x128xf32>, vector<32x128xf32> -> vector<32x128xf32>
    %cst_8 = arith.constant 2.000000e+00 : f32
    %7 = vector.broadcast %cst_8 : f32 to vector<32x128xf32>
    %8 = arith.mulf %7, %6 : vector<32x128xf32>
    %9 = vector.broadcast %5 : vector<1x128xf32> to vector<32x128xf32>
    %10 = arith.subf %9, %8 : vector<32x128xf32>
    %cst_9 = arith.constant dense<0x7F800000> : vector<32xf32>
    %11 = vector.multi_reduction <minimumf>, %10, %cst_9 [1] : vector<32x128xf32> to vector<32xf32>
    %12 = vector.shape_cast %11 : vector<32xf32> to vector<32x1xf32>
    %13 = tpu.iota {dimensions = array<i32: 1>} : vector<32x128xi32>
    %14 = vector.broadcast %12 : vector<32x1xf32> to vector<32x128xf32>
    %15 = arith.cmpf ole, %10, %14 : vector<32x128xf32>
    %c128_i32 = arith.constant 128 : i32
    %16 = vector.broadcast %c128_i32 : i32 to vector<32x128xi32>
    %17 = arith.select %15, %13, %16 : vector<32x128xi1>, vector<32x128xi32>
    %cst_10 = arith.constant dense<2147483647> : vector<32xi32>
    %18 = vector.multi_reduction <minsi>, %17, %cst_10 [1] : vector<32x128xi32> to vector<32xi32>
    %19 = vector.shape_cast %18 : vector<32xi32> to vector<32x1xi32>
    %20 = vector.broadcast %19 : vector<32x1xi32> to vector<32x128xi32>
    %21 = arith.cmpi eq, %13, %20 : vector<32x128xi32>
    %22 = arith.extui %21 : vector<32x128xi1> to vector<32x128xi32>
    %23 = arith.sitofp %22 : vector<32x128xi32> to vector<32x128xf32>
    %cst_11 = arith.constant dense<0.000000e+00> : vector<32x128xf32>
    %24 = tpu.matmul %23, %3, %cst_11 {dimension_numbers = #tpu.dot_dimension_numbers<[1], [0], [0], [1], [0, 0, 1, 1], [], []>} : vector<32x128xf32>, vector<128x128xf32>, vector<32x128xf32> -> vector<32x128xf32>
    %c0_12 = arith.constant 0 : index
    %c0_13 = arith.constant 0 : index
    %c0_14 = arith.constant 0 : index
    %25 = vector.load %arg5[%c0_12, %c0_13, %c0_14] : memref<1x32x128xf32, #tpu.memory_space<vmem>>, vector<1x32x128xf32>
    %26 = vector.shape_cast %25 : vector<1x32x128xf32> to vector<32x128xf32>
    %27 = vector.shape_cast %24 : vector<32x128xf32> to vector<1x32x128xf32>
    tpu.vector_store %arg5[%c0_12, %c0_13, %c0_14], %27 {strides = array<i32>} : memref<1x32x128xf32, #tpu.memory_space<vmem>>, vector<1x32x128xf32>,
    %c0_15 = arith.constant 0 : index
    %c0_16 = arith.constant 0 : index
    %c0_17 = arith.constant 0 : index
    %28 = vector.load %arg6[%c0_15, %c0_16, %c0_17] : memref<1x32x1xi32, #tpu.memory_space<vmem>>, vector<1x32x1xi32>
    %29 = vector.shape_cast %28 : vector<1x32x1xi32> to vector<32x1xi32>
    %30 = vector.shape_cast %19 : vector<32x1xi32> to vector<1x32x1xi32>
    tpu.vector_store %arg6[%c0_15, %c0_16, %c0_17], %30 {strides = array<i32>} : memref<1x32x1xi32, #tpu.memory_space<vmem>>, vector<1x32x1xi32>,
    return
  }
  func.func @transform_0(%arg0: i32, %arg1: i32) -> (i32, i32, i32) {
    %c0_i32 = arith.constant 0 : i32
    %c0_i32_0 = arith.constant 0 : i32
    return %arg0, %arg1, %c0_i32 : i32, i32, i32
  }
  func.func @transform_1(%arg0: i32, %arg1: i32) -> (i32, i32, i32) {
    %c0_i32 = arith.constant 0 : i32
    %c0_i32_0 = arith.constant 0 : i32
    %c0_i32_1 = arith.constant 0 : i32
    return %arg0, %c0_i32, %c0_i32_0 : i32, i32, i32
  }
  func.func @transform_2(%arg0: i32, %arg1: i32) -> (i32, i32, i32) {
    %c0_i32 = arith.constant 0 : i32
    %c0_i32_0 = arith.constant 0 : i32
    %c0_i32_1 = arith.constant 0 : i32
    return %arg0, %c0_i32, %c0_i32_0 : i32, i32, i32
  }
  func.func @transform_3(%arg0: i32, %arg1: i32) -> (i32, i32, i32) {
    %c0_i32 = arith.constant 0 : i32
    %c0_i32_0 = arith.constant 0 : i32
    return %arg0, %arg1, %c0_i32 : i32, i32, i32
  }
  func.func @transform_4(%arg0: i32, %arg1: i32) -> (i32, i32, i32) {
    %c0_i32 = arith.constant 0 : i32
    %c0_i32_0 = arith.constant 0 : i32
    return %arg0, %arg1, %c0_i32 : i32, i32, i32
  }
}

</mosaic_0001>

<bundles_post_ra>
// kernel: squeeze.1
= control target key start
LH: loop header
LB: loop body
LE: loop exit
PB: predicated region body
PF: predicated region fallthrough
CT: control target
= control target key end

     0   :  { %s85_s0 = inlined_call_operand.vmem [shape: s32[32], index: 0, kind: input, shape index: {}]   ;;  %s86_s1 = inlined_call_operand.hbm [shape: s32[2,16], index: 1, kind: output, shape index: {}]  }
   0x1   :  { %v5_v0 = vld [vmem:[%s85_s0] sm:$0x1] }
   0x2   :  { %2 = vsyncpa [#allocation1], 0  ;;  %6 = vst [vmem:[#allocation3] sm:$0x1] %v5_v0  ;;  %vm8_vm0 = vcmask 130048   ;;  %s58_s0 = smov 112  }
   0x3   :  { %s59_s8 = smov [#allocation0]  }
   0x4   :  { %s26_s9 = sshll.u32 %s59_s8, 4  ;;  %s27_s9 = int_to_ptr.vmem [resolvable:$true] %s26_s9 }
   0x5   :  { %s34_s10 = scalar_lea.vmem %s27_s9, 32  ;;  %p39_p1 = scmp.lt.s32.totalorder %s27_s9, %s27_s9 }
   0x6   :  { %p35_p0 = scmp.ne.s32.totalorder %s27_s9, %s34_s10  ;;  %p40_p2 = scmp.lt.s32.totalorder %s34_s10, %s34_s10 }
   0x8   :  { %p41_p3 = por %p40_p2, %p39_p1 }
   0x9   :  { %v10_v1 = vld [vmem:[#allocation3] sm:$0x1]  }
   0xa   :  { %v7_v2 = vld [vmem:[#allocation3] sm:$0x1]   ;;  %11 = vrot.lane.b32.xlu0 %v10_v1, %s58_s0  ;;  %p42_p4 = pnand %p41_p3, %p35_p0 }
   0xb   :  { %9 = vst.msk [vmem:[#allocation2] sm:$0x1] %vm8_vm0, %v7_v2  }
  0x7c   :  { %v12_v3 = vpop.permute.xlu0 %11  }
  0x7d   :  { %15 = vst.msk [vmem:[#allocation2 + $0x1] sm:$0x1] %vm8_vm0, %v12_v3  }
  0x84   :  { %v19_v4 = vld [vmem:[#allocation2] sm:$0x3] }
  0x85   :  { %21 = vst [vmem:[#allocation0] sm:$0x3] %v19_v4 }
  0x86   :  { %45 = shalt.err (!%p42_p4)
}
  0x87   :  { %s46_s13 = scalar_lea.hbm %s86_s1, 32 }
  0x88   :  { %p47_p5 = scmp.ne.s32.totalorder %s86_s1, %s46_s13  ;;  %p50_p6 = scmp.lt.u32.totalorder %s46_s13, %s86_s1 }
  0x8a   :  { %p52_p7 = pnand %p50_p6, %p47_p5 }
  0x8c   :  { %55 = shalt.err (!%p52_p7)
}
  0x8d   :  { %29 = dma.vmem_to_hbm [thread:$0]  %s27_s9, 32, %s86_s1, [#allocation1]  }
  0x8e   :  { %56 = dma.done.wait [#allocation1], 32  }
  0x8f   :  { %57 = vsyncadd [#allocation1], 4294967264 }
  0x90   :  { %31 = vsyncpa [#allocation1], 1 }

// kernel: euclidean_codebook_forward.1
= control target key start
LH: loop header
LB: loop body
LE: loop exit
PB: predicated region body
PF: predicated region fallthrough
CT: control target
= control target key end

     0   :  { %s684_s0 = inlined_call_operand.vmem [shape: f32[1,32,128], index: 0, kind: input, shape index: {}]   ;;  %s685_s1 = inlined_call_operand.vmem [shape: f32[1,128,128], index: 1, kind: input, shape index: {}]   ;;  %s686_s2 = inlined_call_operand.vmem [shape: f32[1,1,128], index: 2, kind: input, shape index: {}]   ;;  %s687_s3 = inlined_call_operand.hbm [shape: f32[1,32,128], index: 3, kind: output, shape index: {0}]   ;;  %s688_s4 = inlined_call_operand.vmem [shape: s32[1,32,1], index: 4, kind: output, shape index: {1}]  }
   0x1   :  { %v21_v0 = vld [vmem:[%s685_s1] sm:$0xff]  ;;  %v22_v1 = vld [vmem:[%s685_s1 + $0x8] sm:$0xff]  ;;  %v23_v2 = vld [vmem:[%s685_s1 + $0x10] sm:$0xff] }
   0x2   :  { %v462_v3 = vpack.c.bf16 %v22_v1, %v21_v0  ;;  %v24_v4 = vld [vmem:[%s685_s1 + $0x18] sm:$0xff]  ;;  %v25_v6 = vld [vmem:[%s685_s1 + $0x20] sm:$0xff]  ;;  %v26_v7 = vld [vmem:[%s685_s1 + $0x28] sm:$0xff] }
   0x3   :  { %v466_v5 = vpack.c.bf16 %v24_v4, %v23_v2  ;;  %v17_v8 = vld [vmem:[%s684_s0] sm:$0xff] }
   0x4   :  { %463 = vmatprep.subr.bf16.mxu0 %v462_v3  ;;  %495 = vmatprep.subr.bf16.mxu1 %v462_v3 }
   0x5   :  { %465 = vmatpush3.bf16.xpose.msra.mxu0 %v462_v3  ;;  %497 = vmatpush3.bf16.msra.mxu1 %v462_v3 }
   0x6   :  { %467 = vmatprep.subr.bf16.mxu0 %v466_v5  ;;  %499 = vmatprep.subr.bf16.mxu1 %v466_v5 }
   0x7   :  { %418 = vmatprep.mubr.f32.mxu0 %v17_v8 }
   0x8   :  { %10 = vsyncpa [#allocation3], 0  ;;  %v470_v9 = vpack.c.bf16 %v26_v7, %v25_v6  ;;  %v27_v10 = vld [vmem:[%s685_s1 + $0x30] sm:$0xff]  ;;  %v28_v11 = vld [vmem:[%s685_s1 + $0x38] sm:$0xff]  ;;  %v145_v41 = vlaneseq  ;;  %vm312_vm8 = vcmask 7168   ;;  %s555_s10 = smov [#allocation2]  }
   0x9   :  { %501 = vmatpush3.bf16.msra.mxu1 %v466_v5  ;;  %v474_v12 = vpack.c.bf16 %v28_v11, %v27_v10  ;;  %v29_v13 = vld [vmem:[%s685_s1 + $0x40] sm:$0xff]  ;;  %v30_v14 = vld [vmem:[%s685_s1 + $0x48] sm:$0xff]  ;;  %v31_v16 = vld [vmem:[%s685_s1 + $0x50] sm:$0xff]  ;;  %s322_s11 = sshll.u32 %s555_s10, 4  ;;  %s323_s11 = int_to_ptr.vmem [resolvable:$true] %s322_s11 }
   0xa   :  { %503 = vmatprep.subr.bf16.mxu1 %v470_v9  ;;  %v478_v15 = vpack.c.bf16 %v30_v14, %v29_v13  ;;  %v32_v17 = vld [vmem:[%s685_s1 + $0x58] sm:$0xff]  ;;  %v33_v19 = vld [vmem:[%s685_s1 + $0x60] sm:$0xff]  ;;  %v34_v20 = vld [vmem:[%s685_s1 + $0x68] sm:$0xff]  ;;  %v646_v42 = vand.u32 127, %v145_v41  ;;  %s530_s12 = scalar_lea.vmem %s323_s11, 512  ;;  %p535_p1 = scmp.lt.s32.totalorder %s323_s11, %s323_s11 }
   0xb   :  { %v482_v18 = vpack.c.bf16 %v32_v17, %v31_v16  ;;  %v486_v21 = vpack.c.bf16 %v34_v20, %v33_v19  ;;  %v35_v22 = vld [vmem:[%s685_s1 + $0x70] sm:$0xff]  ;;  %v36_v23 = vld [vmem:[%s685_s1 + $0x78] sm:$0xff]  ;;  %v18_v25 = vld [vmem:[%s684_s0 + $0x8] sm:$0xff]  ;;  %p531_p0 = scmp.ne.s32.totalorder %s323_s11, %s530_s12  ;;  %p536_p2 = scmp.lt.s32.totalorder %s530_s12, %s530_s12 }
   0xc   :  { %v490_v24 = vpack.c.bf16 %v36_v23, %v35_v22  ;;  %v19_v26 = vld [vmem:[%s684_s0 + $0x10] sm:$0xff]  ;;  %v20_v27 = vld [vmem:[%s684_s0 + $0x18] sm:$0xff]  ;;  %v337_v30 = vld [vmem:[%s686_s2] ss:$0 sm:$0xff] }
   0xd   :  { %469 = vmatpush3.bf16.xpose.msra.mxu0 %v466_v5  ;;  %505 = vmatpush3.bf16.msra.mxu1 %v470_v9  ;;  %p537_p3 = por %p536_p2, %p535_p1 }
   0xe   :  { %471 = vmatprep.subr.bf16.mxu0 %v470_v9  ;;  %507 = vmatprep.subr.bf16.mxu1 %v474_v12 }
   0xf   :  { %p538_p4 = pnand %p537_p3, %p531_p0 }
  0x11   :  { %509 = vmatpush3.bf16.msra.mxu1 %v474_v12 }
  0x12   :  { %511 = vmatprep.subr.bf16.mxu1 %v478_v15 }
  0x15   :  { %473 = vmatpush3.bf16.xpose.msra.mxu0 %v470_v9  ;;  %513 = vmatpush3.bf16.msra.mxu1 %v478_v15 }
  0x16   :  { %475 = vmatprep.subr.bf16.mxu0 %v474_v12  ;;  %515 = vmatprep.subr.bf16.mxu1 %v482_v18 }
  0x19   :  { %517 = vmatpush3.bf16.msra.mxu1 %v482_v18 }
  0x1a   :  { %519 = vmatprep.subr.bf16.mxu1 %v486_v21 }
  0x1d   :  { %477 = vmatpush3.bf16.xpose.msra.mxu0 %v474_v12  ;;  %521 = vmatpush3.bf16.msra.mxu1 %v486_v21 }
  0x1e   :  { %479 = vmatprep.subr.bf16.mxu0 %v478_v15  ;;  %523 = vmatprep.subr.bf16.mxu1 %v490_v24 }
  0x21   :  { %525 = vmatpush3.bf16.msra.mxu1 %v490_v24 }
  0x25   :  { %481 = vmatpush3.bf16.xpose.msra.mxu0 %v478_v15 }
  0x26   :  { %483 = vmatprep.subr.bf16.mxu0 %v482_v18 }
  0x2d   :  { %485 = vmatpush3.bf16.xpose.msra.mxu0 %v482_v18 }
  0x2e   :  { %487 = vmatprep.subr.bf16.mxu0 %v486_v21 }
  0x35   :  { %489 = vmatpush3.bf16.xpose.msra.mxu0 %v486_v21 }
  0x36   :  { %491 = vmatprep.subr.bf16.mxu0 %v490_v24 }
  0x3d   :  { %493 = vmatpush3.bf16.xpose.msra.mxu0 %v490_v24 }
  0x44   :  { %419 = vmatmul.mubr.f32.vlgmr.msra.gmra.mrb[0].mxu0 %v18_v25  ;;  %v554_v25 = vmov 1.0  }
  0x45   :  { %421 = vmatprep.mubr.f32.mxu0 %v19_v26 }
  0x48   :  { %422 = vmatmul.mubr.f32.gmra.mrb[2].mxu0 %v20_v27 }
 0x117   :  { %v420_v28 = vpop.f32.mrb[0].mxu0 }
 0x118   :  { %v104_v29 = vpop.f32.mrb[1].mxu0  ;;  %v124_v32 = vmul.f32 2.0, %v420_v28 }
 0x119   :  { %v123_v31 = vmul.f32 2.0, %v104_v29 }
 0x11a   :  { %v134_v38 = vsub.f32 %v337_v30, %v124_v32 }
 0x11b   :  { %v423_v33 = vpop.f32.mrb[2].mxu0  ;;  %v133_v34 = vsub.f32 %v337_v30, %v123_v31 }
 0x11c   :  { %v114_v35 = vpop.f32.mrb[3].mxu0  ;;  %v126_v37 = vmul.f32 2.0, %v423_v33 }
 0x11d   :  { %v125_v36 = vmul.f32 2.0, %v114_v35  ;;  %137 = vmin.xlane.f32.xlu0 %v133_v34 }
 0x11e   :  { %v136_v40 = vsub.f32 %v337_v30, %v126_v37 }
 0x11f   :  { %v135_v39 = vsub.f32 %v337_v30, %v125_v36 }
 0x121   :  { %139 = vmin.xlane.f32.xlu0 %v134_v38  ;;  %141 = vmin.xlane.f32.xlu1 %v135_v39 }
 0x125   :  { %143 = vmin.xlane.f32.xlu1 %v136_v40 }
 0x1aa   :  { %v138_v43 = vpop.xlane.xlu0 %137 }
 0x1ab   :  { %vm147_vm0 = vcmp.le.f32.partialorder %v133_v34, %v138_v43 }
 0x1ac   :  { %v151_v44 = vsel %vm147_vm0, %v646_v42, 128 }
 0x1ad   :  { %v156_v45 = vshra.s32 %v151_v44, 16  ;;  %v155_v59 = vand.u32 65535, %v151_v44 }
 0x1ae   :  { %v140_v46 = vpop.xlane.xlu0 %139  ;;  %v142_v47 = vpop.xlane.xlu1 %141 }
 0x1af   :  { %vm148_vm1 = vcmp.le.f32.partialorder %v134_v38, %v140_v46  ;;  %vm149_vm2 = vcmp.le.f32.partialorder %v135_v39, %v142_v47  ;;  %v158_v48 = vcvt.s32.f32 %v156_v45  ;;  %v157_v63 = vcvt.s32.f32 %v155_v59 }
 0x1b0   :  { %v152_v49 = vsel %vm148_vm1, %v646_v42, 128  ;;  %v153_v50 = vsel %vm149_vm2, %v646_v42, 128 }
 0x1b1   :  { %159 = vmin.xlane.f32.xlu0 %v158_v48  ;;  %v170_v51 = vshra.s32 %v152_v49, 16  ;;  %v184_v52 = vshra.s32 %v153_v50, 16  ;;  %v169_v60 = vand.u32 65535, %v152_v49  ;;  %v183_v61 = vand.u32 65535, %v153_v50 }
 0x1b2   :  { %v144_v53 = vpop.xlane.xlu1 %143 }
 0x1b3   :  { %vm150_vm3 = vcmp.le.f32.partialorder %v136_v40, %v144_v53  ;;  %v172_v54 = vcvt.s32.f32 %v170_v51  ;;  %v186_v55 = vcvt.s32.f32 %v184_v52  ;;  %v185_v4 = vcvt.s32.f32 %v183_v61 }
 0x1b4   :  { %v154_v56 = vsel %vm150_vm3, %v646_v42, 128  ;;  %v171_v5 = vcvt.s32.f32 %v169_v60 }
 0x1b5   :  { %173 = vmin.xlane.f32.xlu1 %v172_v54  ;;  %187 = vmin.xlane.f32.xlu0 %v186_v55  ;;  %v198_v57 = vshra.s32 %v154_v56, 16  ;;  %v197_v1 = vand.u32 65535, %v154_v56 }
 0x1b7   :  { %v200_v58 = vcvt.s32.f32 %v198_v57  ;;  %v199_v9 = vcvt.s32.f32 %v197_v1 }
 0x1b9   :  { %201 = vmin.xlane.f32.xlu1 %v200_v58 }
 0x23e   :  { %v160_v62 = vpop.xlane.xlu0 %159 }
 0x23f   :  { %vm161_vm4 = vcmp.eq.f32.partialorder %v158_v48, %v160_v62  ;;  %v166_v11 = vcvt.f32.s32 %v160_v62 }
 0x240   :  { %v162_v0 = vsel %vm161_vm4, %v157_v63, inf }
 0x241   :  { %163 = vmin.xlane.f32.xlu0 %v162_v0  ;;  %v167_v15 = vshll.u32 %v166_v11, 16 }
 0x242   :  { %v188_v2 = vpop.xlane.xlu0 %187  ;;  %v174_v3 = vpop.xlane.xlu1 %173 }
 0x243   :  { %vm189_vm5 = vcmp.eq.f32.partialorder %v186_v55, %v188_v2  ;;  %vm175_vm6 = vcmp.eq.f32.partialorder %v172_v54, %v174_v3  ;;  %v194_v12 = vcvt.f32.s32 %v188_v2  ;;  %v180_v13 = vcvt.f32.s32 %v174_v3 }
 0x244   :  { %v190_v6 = vsel %vm189_vm5, %v185_v4, inf  ;;  %v176_v7 = vsel %vm175_vm6, %v171_v5, inf }
 0x245   :  { %191 = vmin.xlane.f32.xlu0 %v190_v6  ;;  %177 = vmin.xlane.f32.xlu1 %v176_v7  ;;  %v195_v18 = vshll.u32 %v194_v12, 16  ;;  %v181_v19 = vshll.u32 %v180_v13, 16 }
 0x246   :  { %v202_v8 = vpop.xlane.xlu1 %201 }
 0x247   :  { %vm203_vm7 = vcmp.eq.f32.partialorder %v200_v58, %v202_v8  ;;  %v208_v22 = vcvt.f32.s32 %v202_v8 }
 0x248   :  { %v204_v10 = vsel %vm203_vm7, %v199_v9, inf }
 0x249   :  { %205 = vmin.xlane.f32.xlu1 %v204_v10  ;;  %v209_v29 = vshll.u32 %v208_v22, 16 }
 0x2ce   :  { %v164_v14 = vpop.xlane.xlu0 %163 }
 0x2cf   :  { %v165_v16 = vcvt.f32.s32 %v164_v14 }
 0x2d1   :  { %v168_v17 = vadd.s32 %v167_v15, %v165_v16 }
 0x2d2   :  { %v192_v20 = vpop.xlane.xlu0 %191  ;;  %v178_v21 = vpop.xlane.xlu1 %177 }
 0x2d3   :  { %v193_v23 = vcvt.f32.s32 %v192_v20  ;;  %v179_v24 = vcvt.f32.s32 %v178_v21  ;;  %vm211_vm9 = vcmp.eq.s32.totalorder %v646_v42, %v168_v17  ;;  %313 = vst.msk [vmem:[%s688_s4] sm:$0xff] %vm312_vm8, %v168_v17 }
 0x2d4   :  { %456 = vmatprep.mubr.msk.f32.mxu1 %vm211_vm9, %v554_v25 }
 0x2d5   :  { %v196_v26 = vadd.s32 %v195_v18, %v193_v23  ;;  %v182_v27 = vadd.s32 %v181_v19, %v179_v24 }
 0x2d6   :  { %v206_v28 = vpop.xlane.xlu1 %205 }
 0x2d7   :  { %315 = vst.msk [vmem:[%s688_s4 + $0x10] sm:$0xff] %vm312_vm8, %v196_v26  ;;  %314 = vst.msk [vmem:[%s688_s4 + $0x8] sm:$0xff] %vm312_vm8, %v182_v27  ;;  %v207_v30 = vcvt.f32.s32 %v206_v28  ;;  %vm212_vm10 = vcmp.eq.s32.totalorder %v646_v42, %v182_v27  ;;  %vm213_vm11 = vcmp.eq.s32.totalorder %v646_v42, %v196_v26 }
 0x2d8   :  { %457 = vmatmul.mubr.msk.f32.vlgmr.msra.gmra.mrb[0].mxu1 %vm212_vm10, %v554_v25 }
 0x2d9   :  { %v210_v31 = vadd.s32 %v209_v29, %v207_v30  ;;  %459 = vmatprep.mubr.msk.f32.mxu1 %vm213_vm11, %v554_v25 }
 0x2db   :  { %316 = vst.msk [vmem:[%s688_s4 + $0x18] sm:$0xff] %vm312_vm8, %v210_v31  ;;  %vm214_vm12 = vcmp.eq.s32.totalorder %v646_v42, %v210_v31 }
 0x2dc   :  { %460 = vmatmul.mubr.msk.f32.gmra.mrb[2].mxu1 %vm214_vm12, %v554_v25 }
 0x3ab   :  { %v458_v32 = vpop.f32.mrb[0].mxu1 }
 0x3ac   :  { %309 = vst [vmem:[#allocation2 + $0x8] sm:$0xff] %v458_v32  ;;  %v289_v33 = vpop.f32.mrb[1].mxu1 }
 0x3ad   :  { %308 = vst [vmem:[#allocation2] sm:$0xff] %v289_v33 }
 0x3af   :  { %v461_v34 = vpop.f32.mrb[2].mxu1 }
 0x3b0   :  { %311 = vst [vmem:[#allocation2 + $0x18] sm:$0xff] %v461_v34  ;;  %v299_v35 = vpop.f32.mrb[3].mxu1 }
 0x3b1   :  { %310 = vst [vmem:[#allocation2 + $0x10] sm:$0xff] %v299_v35 }
 0x3b2   :  { %541 = shalt.err (!%p538_p4)
}
 0x3b3   :  { %s542_s14 = scalar_lea.hbm %s687_s3, 512 }
 0x3b4   :  { %p543_p5 = scmp.ne.s32.totalorder %s687_s3, %s542_s14  ;;  %p546_p6 = scmp.lt.u32.totalorder %s542_s14, %s687_s3 }
 0x3b6   :  { %p548_p7 = pnand %p546_p6, %p543_p5 }
 0x3b8   :  { %551 = shalt.err (!%p548_p7)
}
 0x3b9   :  { %s556_s19 = smov 128   ;;  %s557_s20 = smov 8  }
 0x3ba   :  { %328 = dma.vmem_to_hbm [thread:$0]  %s323_s11, 512, %s687_s3, [#allocation3], %s556_s19, %s556_s19, %s557_s20  }
 0x3bb   :  { %552 = dma.done.wait [#allocation3], 512  }
 0x3bc   :  { %553 = vsyncadd [#allocation3], 4294966784 }
 0x3bd   :  { %336 = vsyncpa [#allocation3], 1 }

</bundles_post_ra>
